<compile_context>
chip_gen: v7x
topology: tpu7x:2x2x1
jax: 0.10.0
libtpu: 0.0.40
codegen_flags: <defaults>
</compile_context>

<pallas_src>
from math import sqrt

import jax
import jax.numpy as jnp
from jax import lax
from jax.experimental import pallas as pl
from jax.experimental.pallas import tpu as pltpu

LANES = 128


def _swish(v):
    return v * jax.nn.sigmoid(v)


def _round_up(x, m):
    return ((x + m - 1) // m) * m


def _cdiv(a, b):
    return -(-a // b)


def _num_tensorcores():
    """Best-effort TensorCore count of device 0 (for megacore-aware tiling)."""
    try:
        kind = jax.devices()[0].device_kind.lower()
    except Exception:
        return 1
    return 2 if any(t in kind for t in ("v4", "v5p", "v7")) else 1


def _pick_tile_p(ep, n_cores, cap=1024):
    """Packed-row tile size.

    Single-TC chips (v5e/v6e): one big tile up to `cap` rows (4096 edges) --
    the forced extra grid step is pure ~0.35us overhead there.  Multi-TC
    chips: an even, balanced number of tiles so both cores get equal work.
    """
    ep8 = _round_up(max(ep, 1), 8)
    if n_cores <= 1 or ep8 < 16:
        if ep8 <= cap:
            return ep8
        return _round_up(_cdiv(ep8, _cdiv(ep8, cap)), 8)
    if ep8 <= 2 * cap:
        return _round_up(_cdiv(ep8, 2), 8)          # two ~equal tiles
    n_tiles = _round_up(_cdiv(ep8, cap), 2)          # even number of tiles
    return _round_up(_cdiv(ep8, n_tiles), 8)


def _embedding_kernel(ij_ref,     # (tile_p, 2*pack) int32, pre-offset one-hot columns
                      rbf_ref,    # (tile_p, pack*R)  lane-packed rbf
                      tgat_ref,   # (2*pack*n_pad, 128)  [kron(I,x@W1); kron(I,x@W2)]
                      wrbf_ref,   # (pack*R, 128)     kron(I, W_rbf)
                      brbf_ref,   # (1, 128)          tiled b_rbf
                      w3_ref,     # (128, 128)        kron(I, W3)
                      blin_ref,   # (1, 128)          tiled b_lin
                      out_ref):   # (tile_p, 128)     lane-packed output
    tile_p = out_ref.shape[0]
    k_gat = tgat_ref.shape[0]          # 2 * pack * n_pad
    n_groups = ij_ref.shape[1]         # 2 * pack  (i groups then j groups)

    # ---- rbf branch: swish(rbf @ W_rbf + b_rbf), lane-packed ---------------
    h_rbf = _swish(
        jnp.dot(rbf_ref[...], wrbf_ref[...], preferred_element_type=jnp.float32)
        + brbf_ref[...])

    # ---- vectorized edge gather fused with W1 / W2 -------------------------
    # Row p of the one-hot has a single 1 per group g at column ij_ref[p, g]
    # (indices were pre-offset by g*n_pad in the wrapper).  Because the table
    # is block-diagonal per group, onehot @ tgat == x_emb[i]@W1 + x_emb[j]@W2
    # already in lane-packed layout -- one MXU pass, zero scalar-gather work.
    idx = ij_ref[...]
    col = lax.broadcasted_iota(jnp.int32, (tile_p, k_gat), 1)
    onehot = (col == idx[:, 0:1]).astype(jnp.float32)
    for g in range(1, n_groups):                     # static unroll (8 groups)
        onehot = onehot + (col == idx[:, g:g + 1]).astype(jnp.float32)

    acc = jnp.dot(onehot, tgat_ref[...], preferred_element_type=jnp.float32)
    acc = acc + jnp.dot(h_rbf, w3_ref[...], preferred_element_type=jnp.float32)
    out_ref[...] = _swish(acc + blin_ref[...]).astype(out_ref.dtype)


def prepare_embedding_params(w_rbf, b_rbf, w1, w2, w3, b_lin):
    """One-time (init-time) prep of static block-diagonal weights / tiled
    biases.  All weights are (in, out), i.e. transposed vs nn.Linear."""
    f32 = jnp.float32
    h = w1.shape[0]
    assert LANES % h == 0, "hidden_channels must divide 128 for lane packing"
    pack = LANES // h
    eye = jnp.eye(pack, dtype=f32)
    return dict(
        w_rbf_bd=jnp.kron(eye, w_rbf.astype(f32)),                 # (pack*R, 128)
        b_rbf_t=jnp.tile(b_rbf.astype(f32).reshape(1, h), (1, pack)),
        w1=w1.astype(f32),                                         # fused per call
        w2=w2.astype(f32),                                         # with x_emb
        w3_bd=jnp.kron(eye, w3.astype(f32)),                       # (128, 128)
        b_lin_t=jnp.tile(b_lin.astype(f32).reshape(1, h), (1, pack)),
    )


@jax.jit
def embedding_block_pallas(x_emb, rbf, i_idx, j_idx, params):
    """Fused (edge gather + lin_rbf + swish + lin + swish)."""
    f32 = jnp.float32
    N, H = x_emb.shape
    E, R = rbf.shape
    assert LANES % H == 0, "hidden_channels must divide 128 for lane packing"
    pack = LANES // H

    ep = _cdiv(E, pack)                       # packed rows before padding
    tile_p = _pick_tile_p(ep, _num_tensorcores())
    ep_pad = _round_up(ep, tile_p)
    e_pad = ep_pad * pack
    n_tiles = ep_pad // tile_p
    n_pad = _round_up(N, 16)                  # keeps the gather K-dim 128-aligned
    k_gat = 2 * pack * n_pad

    # --- per-call prep (cheap: O(N*H^2 + E*R)) ------------------------------
    # Fused gather tables: kron(I_pack, x_emb @ W1) stacked over kron(.., W2).
    # TODO(synk): for very large node counts the one-hot gather matmul scales
    # O(E*N*H); switch to a DMA / take-based gather path in that regime.
    x_pad = jnp.pad(x_emb.astype(f32), ((0, n_pad - N), (0, 0)))
    eye = jnp.eye(pack, dtype=f32)
    t_gather = jnp.concatenate(
        [jnp.kron(eye, x_pad @ params["w1"]),
         jnp.kron(eye, x_pad @ params["w2"])], axis=0)             # (k_gat, 128)

    i_p = jnp.pad(i_idx.astype(jnp.int32), (0, e_pad - E)).reshape(ep_pad, pack)
    j_p = jnp.pad(j_idx.astype(jnp.int32), (0, e_pad - E)).reshape(ep_pad, pack)
    # Pre-offset so group g's one-hot column is g*n_pad + node_index.
    ij_glob = (jnp.concatenate([i_p, j_p], axis=1)
               + jnp.arange(2 * pack, dtype=jnp.int32)[None, :] * n_pad)

    rbf_packed = jnp.pad(rbf.astype(f32),
                         ((0, e_pad - E), (0, 0))).reshape(ep_pad, pack * R)

    edge_spec = lambda w: pl.BlockSpec((tile_p, w), lambda p: (p, 0))
    rep_spec = lambda shp: pl.BlockSpec(shp, lambda p: (0,) * len(shp))

    flops = 2 * ep_pad * LANES * (pack * R + k_gat + LANES)
    transcendentals = 2 * ep_pad * LANES
    bytes_accessed = 4 * (ep_pad * (2 * pack + pack * R + LANES)
                          + (k_gat + pack * R + LANES + 2) * LANES)

    out_packed = pl.pallas_call(
        _embedding_kernel,
        out_shape=jax.ShapeDtypeStruct((ep_pad, LANES), f32),
        grid_spec=pltpu.PrefetchScalarGridSpec(
            num_scalar_prefetch=0,
            grid=(n_tiles,),
            in_specs=[
                edge_spec(2 * pack),               # pre-offset i/j indices
                edge_spec(pack * R),               # packed rbf
                rep_spec((k_gat, LANES)),          # fused gather+W1/W2 tables
                rep_spec((pack * R, LANES)),       # W_rbf block-diag
                rep_spec((1, LANES)),              # b_rbf tiled
                rep_spec((LANES, LANES)),          # W3 block-diag
                rep_spec((1, LANES)),              # b_lin tiled
            ],
            out_specs=pl.BlockSpec((tile_p, LANES), lambda p: (p, 0)),
        ),
        compiler_params=pltpu.CompilerParams(
            dimension_semantics=("parallel",)),
        cost_estimate=pl.CostEstimate(flops=flops,
                                      transcendentals=transcendentals,
                                      bytes_accessed=bytes_accessed),
    )(ij_glob, rbf_packed, t_gather,
      params["w_rbf_bd"], params["b_rbf_t"], params["w3_bd"], params["b_lin_t"])

    # Free row-major unpack: packed row p, lane group q  ->  edge pack*p + q.
    return out_packed.reshape(e_pad, H)[:E]


def embedding_block_ref(x_emb, rbf, i_idx, j_idx, w_rbf, b_rbf, w1, w2, w3, b_lin):
    h_rbf = _swish(rbf @ w_rbf + b_rbf)
    return _swish(x_emb[i_idx] @ w1 + x_emb[j_idx] @ w2 + h_rbf @ w3 + b_lin)


if __name__ == "__main__":
    # ---- model hyper-parameters (small, consistent with the module) ----
    num_radial = 8
    hidden_channels = 32
    factor = hidden_channels // 4             # 8
    emb_dim = factor * 2                      # 16 per table; concat -> H

    N = 24    # number of nodes (atoms)
    E = 80    # number of edges (exercises padding; 1 or 2 grid steps)

    key = jax.random.PRNGKey(0)
    keys = jax.random.split(key, 10)

    # ---- deterministic parameter init (shapes from __init__) ----
    s3 = sqrt(3.0)
    resi_emb_w = jax.random.uniform(keys[0], (20, emb_dim), jnp.float32, -s3, s3)
    atom_emb_w = jax.random.uniform(keys[1], (95, emb_dim), jnp.float32, -s3, s3)

    # lin_rbf: Linear(num_radial, hidden_channels); stored (in, out)
    lim_rbf = 1.0 / sqrt(num_radial)
    w_rbf = jax.random.uniform(keys[2], (num_radial, hidden_channels),
                               jnp.float32, -lim_rbf, lim_rbf)
    b_rbf = jax.random.uniform(keys[3], (1, hidden_channels),
                               jnp.float32, -lim_rbf, lim_rbf)

    # lin: Linear(3*hidden_channels, hidden_channels); split along INPUT dim
    lim_lin = 1.0 / sqrt(3 * hidden_channels)
    w_lin = jax.random.uniform(keys[4], (3 * hidden_channels, hidden_channels),
                               jnp.float32, -lim_lin, lim_lin)
    b_lin = jax.random.uniform(keys[5], (1, hidden_channels),
                               jnp.float32, -lim_lin, lim_lin)
    w1 = w_lin[0 * hidden_channels:1 * hidden_channels]   # acts on x[i]
    w2 = w_lin[1 * hidden_channels:2 * hidden_channels]   # acts on x[j]
    w3 = w_lin[2 * hidden_channels:3 * hidden_channels]   # acts on rbf branch

    # ---- deterministic example inputs ----
    resi_idx = jax.random.randint(keys[6], (N,), 0, 20)
    atom_idx = jax.random.randint(keys[7], (N,), 0, 95)
    x = jnp.stack([resi_idx, atom_idx], axis=1)            # [N, 2] int32
    rbf = jax.random.normal(keys[8], (E, num_radial), jnp.float32)
    ij = jax.random.randint(keys[9], (2, E), 0, N)
    i_idx, j_idx = ij[0], ij[1]

    # Node-level embedding lookups + concat (cheap, over N nodes) stay in JAX.
    # TODO(synk): fold the resi/atom table lookups into the kernel too if N
    # ever becomes large enough for them to matter.
    x_emb = jnp.concatenate(
        [jnp.take(resi_emb_w, x[:, 0], axis=0),
         jnp.take(atom_emb_w, x[:, 1], axis=0)], axis=-1)   # [N, H]

    # ---- one-time static weight prep, then the fused Pallas kernel ----
    params = prepare_embedding_params(w_rbf, b_rbf, w1, w2, w3, b_lin)
    out = embedding_block_pallas(x_emb, rbf, i_idx, j_idx, params)
    out = jax.block_until_ready(out)

    ref = embedding_block_ref(x_emb, rbf, i_idx, j_idx,
                              w_rbf, b_rbf, w1, w2, w3, b_lin)
    assert out.shape == (E, hidden_channels)
    # Tolerance allows for MXU f32 multi-pass rounding in the fused gather.
    assert jnp.allclose(out, ref, atol=1e-4, rtol=1e-4), "mismatch vs reference"

    print("KERNEL_OK")
</pallas_src>

<mosaic_0001>
module attributes {stable_mosaic.version = 11 : i64} {
  func.func @_embedding_kernel(%arg0: i32, %arg1: memref<24x8xi32, #tpu.memory_space<vmem>>, %arg2: memref<24x32xf32, #tpu.memory_space<vmem>>, %arg3: memref<256x128xf32, #tpu.memory_space<vmem>>, %arg4: memref<32x128xf32, #tpu.memory_space<vmem>>, %arg5: memref<1x128xf32, #tpu.memory_space<vmem>>, %arg6: memref<128x128xf32, #tpu.memory_space<vmem>>, %arg7: memref<1x128xf32, #tpu.memory_space<vmem>>, %arg8: memref<24x128xf32, #tpu.memory_space<vmem>>) attributes {dimension_semantics = [#tpu.dimension_semantics<parallel>], iteration_bounds = array<i64: 1>, scalar_prefetch = 0 : i64, scratch_operands = 0 : i64, tpu.core_type = #tpu.core_type<tc>, window_params = [{transform_indices = @transform_0, window_bounds = array<i64: 24, 8>}, {transform_indices = @transform_1, window_bounds = array<i64: 24, 32>}, {pipeline_mode = #tpu.pipeline_mode<synchronous>, transform_indices = @transform_2, window_bounds = array<i64: 256, 128>}, {pipeline_mode = #tpu.pipeline_mode<synchronous>, transform_indices = @transform_3, window_bounds = array<i64: 32, 128>}, {pipeline_mode = #tpu.pipeline_mode<synchronous>, transform_indices = @transform_4, window_bounds = array<i64: 1, 128>}, {pipeline_mode = #tpu.pipeline_mode<synchronous>, transform_indices = @transform_5, window_bounds = array<i64: 128, 128>}, {pipeline_mode = #tpu.pipeline_mode<synchronous>, transform_indices = @transform_6, window_bounds = array<i64: 1, 128>}, {transform_indices = @transform_7, window_bounds = array<i64: 24, 128>}]} {
    %c0 = arith.constant 0 : index
    %c0_0 = arith.constant 0 : index
    %0 = vector.load %arg2[%c0, %c0_0] : memref<24x32xf32, #tpu.memory_space<vmem>>, vector<24x32xf32>
    %c0_1 = arith.constant 0 : index
    %c0_2 = arith.constant 0 : index
    %1 = vector.load %arg4[%c0_1, %c0_2] : memref<32x128xf32, #tpu.memory_space<vmem>>, vector<32x128xf32>
    %cst = arith.constant dense<0.000000e+00> : vector<24x128xf32>
    %2 = tpu.matmul %0, %1, %cst {dimension_numbers = #tpu.dot_dimension_numbers<[1], [0], [0], [1], [0, 0, 1, 1], [], []>} : vector<24x32xf32>, vector<32x128xf32>, vector<24x128xf32> -> vector<24x128xf32>
    %c0_3 = arith.constant 0 : index
    %c0_4 = arith.constant 0 : index
    %3 = vector.load %arg5[%c0_3, %c0_4] : memref<1x128xf32, #tpu.memory_space<vmem>>, vector<1x128xf32>
    %4 = vector.broadcast %3 : vector<1x128xf32> to vector<24x128xf32>
    %5 = arith.addf %2, %4 : vector<24x128xf32>
    %6 = arith.negf %5 : vector<24x128xf32>
    %7 = math.exp %6 : vector<24x128xf32>
    %cst_5 = arith.constant 1.000000e+00 : f32
    %8 = vector.broadcast %cst_5 : f32 to vector<24x128xf32>
    %9 = arith.addf %8, %7 : vector<24x128xf32>
    %10 = arith.divf %8, %9 : vector<24x128xf32>
    %11 = arith.mulf %5, %10 : vector<24x128xf32>
    %c0_6 = arith.constant 0 : index
    %c0_7 = arith.constant 0 : index
    %12 = vector.load %arg1[%c0_6, %c0_7] : memref<24x8xi32, #tpu.memory_space<vmem>>, vector<24x8xi32>
    %13 = tpu.iota {dimensions = array<i32: 1>} : vector<24x256xi32>
    %14 = vector.extract_strided_slice %12 {offsets = [0, 0], sizes = [24, 1], strides = [1, 1]} : vector<24x8xi32> to vector<24x1xi32>
    %15 = vector.broadcast %14 : vector<24x1xi32> to vector<24x256xi32>
    %16 = arith.cmpi eq, %13, %15 : vector<24x256xi32>
    %17 = arith.extui %16 : vector<24x256xi1> to vector<24x256xi32>
    %18 = arith.sitofp %17 : vector<24x256xi32> to vector<24x256xf32>
    %19 = vector.extract_strided_slice %12 {offsets = [0, 1], sizes = [24, 1], strides = [1, 1]} : vector<24x8xi32> to vector<24x1xi32>
    %20 = vector.broadcast %19 : vector<24x1xi32> to vector<24x256xi32>
    %21 = arith.cmpi eq, %13, %20 : vector<24x256xi32>
    %22 = arith.extui %21 : vector<24x256xi1> to vector<24x256xi32>
    %23 = arith.sitofp %22 : vector<24x256xi32> to vector<24x256xf32>
    %24 = arith.addf %18, %23 : vector<24x256xf32>
    %25 = vector.extract_strided_slice %12 {offsets = [0, 2], sizes = [24, 1], strides = [1, 1]} : vector<24x8xi32> to vector<24x1xi32>
    %26 = vector.broadcast %25 : vector<24x1xi32> to vector<24x256xi32>
    %27 = arith.cmpi eq, %13, %26 : vector<24x256xi32>
    %28 = arith.extui %27 : vector<24x256xi1> to vector<24x256xi32>
    %29 = arith.sitofp %28 : vector<24x256xi32> to vector<24x256xf32>
    %30 = arith.addf %24, %29 : vector<24x256xf32>
    %31 = vector.extract_strided_slice %12 {offsets = [0, 3], sizes = [24, 1], strides = [1, 1]} : vector<24x8xi32> to vector<24x1xi32>
    %32 = vector.broadcast %31 : vector<24x1xi32> to vector<24x256xi32>
    %33 = arith.cmpi eq, %13, %32 : vector<24x256xi32>
    %34 = arith.extui %33 : vector<24x256xi1> to vector<24x256xi32>
    %35 = arith.sitofp %34 : vector<24x256xi32> to vector<24x256xf32>
    %36 = arith.addf %30, %35 : vector<24x256xf32>
    %37 = vector.extract_strided_slice %12 {offsets = [0, 4], sizes = [24, 1], strides = [1, 1]} : vector<24x8xi32> to vector<24x1xi32>
    %38 = vector.broadcast %37 : vector<24x1xi32> to vector<24x256xi32>
    %39 = arith.cmpi eq, %13, %38 : vector<24x256xi32>
    %40 = arith.extui %39 : vector<24x256xi1> to vector<24x256xi32>
    %41 = arith.sitofp %40 : vector<24x256xi32> to vector<24x256xf32>
    %42 = arith.addf %36, %41 : vector<24x256xf32>
    %43 = vector.extract_strided_slice %12 {offsets = [0, 5], sizes = [24, 1], strides = [1, 1]} : vector<24x8xi32> to vector<24x1xi32>
    %44 = vector.broadcast %43 : vector<24x1xi32> to vector<24x256xi32>
    %45 = arith.cmpi eq, %13, %44 : vector<24x256xi32>
    %46 = arith.extui %45 : vector<24x256xi1> to vector<24x256xi32>
    %47 = arith.sitofp %46 : vector<24x256xi32> to vector<24x256xf32>
    %48 = arith.addf %42, %47 : vector<24x256xf32>
    %49 = vector.extract_strided_slice %12 {offsets = [0, 6], sizes = [24, 1], strides = [1, 1]} : vector<24x8xi32> to vector<24x1xi32>
    %50 = vector.broadcast %49 : vector<24x1xi32> to vector<24x256xi32>
    %51 = arith.cmpi eq, %13, %50 : vector<24x256xi32>
    %52 = arith.extui %51 : vector<24x256xi1> to vector<24x256xi32>
    %53 = arith.sitofp %52 : vector<24x256xi32> to vector<24x256xf32>
    %54 = arith.addf %48, %53 : vector<24x256xf32>
    %55 = vector.extract_strided_slice %12 {offsets = [0, 7], sizes = [24, 1], strides = [1, 1]} : vector<24x8xi32> to vector<24x1xi32>
    %56 = vector.broadcast %55 : vector<24x1xi32> to vector<24x256xi32>
    %57 = arith.cmpi eq, %13, %56 : vector<24x256xi32>
    %58 = arith.extui %57 : vector<24x256xi1> to vector<24x256xi32>
    %59 = arith.sitofp %58 : vector<24x256xi32> to vector<24x256xf32>
    %60 = arith.addf %54, %59 : vector<24x256xf32>
    %c0_8 = arith.constant 0 : index
    %c0_9 = arith.constant 0 : index
    %61 = vector.load %arg3[%c0_8, %c0_9] : memref<256x128xf32, #tpu.memory_space<vmem>>, vector<256x128xf32>
    %cst_10 = arith.constant dense<0.000000e+00> : vector<24x128xf32>
    %62 = tpu.matmul %60, %61, %cst_10 {dimension_numbers = #tpu.dot_dimension_numbers<[1], [0], [0], [1], [0, 0, 1, 1], [], []>} : vector<24x256xf32>, vector<256x128xf32>, vector<24x128xf32> -> vector<24x128xf32>
    %c0_11 = arith.constant 0 : index
    %c0_12 = arith.constant 0 : index
    %63 = vector.load %arg6[%c0_11, %c0_12] : memref<128x128xf32, #tpu.memory_space<vmem>>, vector<128x128xf32>
    %cst_13 = arith.constant dense<0.000000e+00> : vector<24x128xf32>
    %64 = tpu.matmul %11, %63, %cst_13 {dimension_numbers = #tpu.dot_dimension_numbers<[1], [0], [0], [1], [0, 0, 1, 1], [], []>} : vector<24x128xf32>, vector<128x128xf32>, vector<24x128xf32> -> vector<24x128xf32>
    %65 = arith.addf %62, %64 : vector<24x128xf32>
    %c0_14 = arith.constant 0 : index
    %c0_15 = arith.constant 0 : index
    %66 = vector.load %arg7[%c0_14, %c0_15] : memref<1x128xf32, #tpu.memory_space<vmem>>, vector<1x128xf32>
    %67 = vector.broadcast %66 : vector<1x128xf32> to vector<24x128xf32>
    %68 = arith.addf %65, %67 : vector<24x128xf32>
    %69 = arith.negf %68 : vector<24x128xf32>
    %70 = math.exp %69 : vector<24x128xf32>
    %cst_16 = arith.constant 1.000000e+00 : f32
    %71 = vector.broadcast %cst_16 : f32 to vector<24x128xf32>
    %72 = arith.addf %71, %70 : vector<24x128xf32>
    %73 = arith.divf %71, %72 : vector<24x128xf32>
    %74 = arith.mulf %68, %73 : vector<24x128xf32>
    %c0_17 = arith.constant 0 : index
    %c0_18 = arith.constant 0 : index
    %75 = vector.load %arg8[%c0_17, %c0_18] : memref<24x128xf32, #tpu.memory_space<vmem>>, vector<24x128xf32>
    tpu.vector_store %arg8[%c0_17, %c0_18], %74 {strides = array<i32>} : memref<24x128xf32, #tpu.memory_space<vmem>>, vector<24x128xf32>,
    return
  }
  func.func @transform_0(%arg0: i32) -> (i32, i32) {
    %c0_i32 = arith.constant 0 : i32
    %c0_i32_0 = arith.constant 0 : i32
    return %arg0, %c0_i32 : i32, i32
  }
  func.func @transform_1(%arg0: i32) -> (i32, i32) {
    %c0_i32 = arith.constant 0 : i32
    %c0_i32_0 = arith.constant 0 : i32
    return %arg0, %c0_i32 : i32, i32
  }
  func.func @transform_2(%arg0: i32) -> (i32, i32) {
    %c0_i32 = arith.constant 0 : i32
    %c0_i32_0 = arith.constant 0 : i32
    %c0_i32_1 = arith.constant 0 : i32
    return %c0_i32, %c0_i32_0 : i32, i32
  }
  func.func @transform_3(%arg0: i32) -> (i32, i32) {
    %c0_i32 = arith.constant 0 : i32
    %c0_i32_0 = arith.constant 0 : i32
    %c0_i32_1 = arith.constant 0 : i32
    return %c0_i32, %c0_i32_0 : i32, i32
  }
  func.func @transform_4(%arg0: i32) -> (i32, i32) {
    %c0_i32 = arith.constant 0 : i32
    %c0_i32_0 = arith.constant 0 : i32
    %c0_i32_1 = arith.constant 0 : i32
    return %c0_i32, %c0_i32_0 : i32, i32
  }
  func.func @transform_5(%arg0: i32) -> (i32, i32) {
    %c0_i32 = arith.constant 0 : i32
    %c0_i32_0 = arith.constant 0 : i32
    %c0_i32_1 = arith.constant 0 : i32
    return %c0_i32, %c0_i32_0 : i32, i32
  }
  func.func @transform_6(%arg0: i32) -> (i32, i32) {
    %c0_i32 = arith.constant 0 : i32
    %c0_i32_0 = arith.constant 0 : i32
    %c0_i32_1 = arith.constant 0 : i32
    return %c0_i32, %c0_i32_0 : i32, i32
  }
  func.func @transform_7(%arg0: i32) -> (i32, i32) {
    %c0_i32 = arith.constant 0 : i32
    %c0_i32_0 = arith.constant 0 : i32
    return %arg0, %c0_i32 : i32, i32
  }
}

</mosaic_0001>

<bundles_post_ra>
// kernel: embedding_block_pallas.1
= control target key start
LH: loop header
LB: loop body
LE: loop exit
PB: predicated region body
PF: predicated region fallthrough
CT: control target
= control target key end

     0   :  { %v964_v0 = vmov 2   ;;  %v965_v1 = vmov 0.0|0.0   ;;  %vm966_vm0 = vmmov 0   ;;  %v967_v8 = vmov 0.0   ;;  %s1391_s0 = inlined_call_operand.vmem [shape: s32[24,8], index: 0, kind: input, shape index: {}]   ;;  %s1392_s3 = inlined_call_operand.vmem [shape: f32[32,128], index: 3, kind: input, shape index: {}]   ;;  %s1393_s1 = inlined_call_operand.vmem [shape: f32[24,32], index: 1, kind: input, shape index: {}]   ;;  %s1394_s2 = inlined_call_operand.vmem [shape: f32[256,128], index: 2, kind: input, shape index: {}]   ;;  %s1395_s5 = inlined_call_operand.vmem [shape: f32[128,128], index: 5, kind: input, shape index: {}]   ;;  %s1396_s4 = inlined_call_operand.vmem [shape: f32[1,128], index: 4, kind: input, shape index: {}]   ;;  %s1397_s6 = inlined_call_operand.vmem [shape: f32[1,128], index: 6, kind: input, shape index: {}]   ;;  %s1398_s7 = inlined_call_operand.vmem [shape: f32[24,128], index: 7, kind: output, shape index: {}]  }
   0x1   :  { %919 = vset.pattern.permute.xlu1 %v964_v0  ;;  %845 = vmatprep.subr.bf16.mxu0 %v965_v1  ;;  %v1020_v2 = vld [vmem:[%s1391_s0] sm:$0xff]  ;;  %v30_v4 = vld [vmem:[%s1392_s3 + $0x8] sm:$0xff]  ;;  %v31_v6 = vld [vmem:[%s1392_s3 + $0x10] sm:$0xff]  ;;  %v968_v9 = vmov 1   ;;  %v969_v12 = vmov 0   ;;  %vm40_vm1 = vcmask 261120  }
   0x2   :  { %v29_v3 = vld [vmem:[%s1392_s3] sm:$0xff]  ;;  %218 = vperm.xlu1 %919, %v1020_v2   ;;  %v32_v7 = vld [vmem:[%s1392_s3 + $0x18] sm:$0xff]  ;;  %795 = vmatprep.mubr.msk.f32.mxu0 %vm966_vm0, %v967_v8  ;;  %v1041_v11 = vld [vmem:[%s1391_s0 + $0x8] sm:$0xff]  ;;  %v970_v14 = vmov 3   ;;  %v971_v18 = vmov 4   ;;  %v972_v19 = vmov 6  }
   0x3   :  { %v846_v5 = vpack.c.bf16 %v30_v4, %v29_v3  ;;  %918 = vset.pattern.permute.xlu0 %v968_v9  ;;  %851 = vmatprep.subr.bf16.mxu1 %v965_v1  ;;  %v849_v10 = vpack.c.bf16 %v32_v7, %v31_v6  ;;  %v26_v13 = vld [vmem:[%s1393_s1] sm:$0xff]  ;;  %v27_v15 = vld [vmem:[%s1393_s1 + $0x8] sm:$0xff]  ;;  %v28_v16 = vld [vmem:[%s1393_s1 + $0x10] sm:$0xff]  ;;  %v973_v26 = vmov 7   ;;  %v974_v33 = vmov 5  }
   0x4   :  { %185 = vperm.xlu0 %918, %v1020_v2   ;;  %836 = vmatprep.mubr.msk.f32.mxu1 %vm966_vm0, %v967_v8  ;;  %v1072_v17 = vld [vmem:[%s1391_s0 + $0x10] sm:$0xff]  ;;  %v431_v20 = vld [vmem:[%s1394_s2 + $0x80] sm:$0xff]  ;;  %v432_v21 = vld [vmem:[%s1394_s2 + $0x88] sm:$0xff] }
   0x5   :  { %847 = vmatpush3.bf16.msra.mxu0 %v846_v5  ;;  %v415_v22 = vld [vmem:[%s1394_s2] sm:$0xff]  ;;  %v875_v23 = vpack.c.bf16 %v432_v21, %v431_v20  ;;  %v416_v24 = vld [vmem:[%s1394_s2 + $0x8] sm:$0xff]  ;;  %v433_v27 = vld [vmem:[%s1394_s2 + $0x90] sm:$0xff] }
   0x6   :  { %848 = vmatprep.subr.bf16.mxu0 %v965_v1  ;;  %920 = vset.pattern.permute.xlu1 %v969_v12  ;;  %v877_v25 = vpack.c.bf16 %v416_v24, %v415_v22  ;;  %v434_v28 = vld [vmem:[%s1394_s2 + $0x98] sm:$0xff]  ;;  %v417_v29 = vld [vmem:[%s1394_s2 + $0x10] sm:$0xff]  ;;  %v435_v34 = vld [vmem:[%s1394_s2 + $0xa0] sm:$0xff] }
   0x7   :  { %161 = vperm.xlu1 %920, %v1041_v11   ;;  %v879_v30 = vpack.c.bf16 %v434_v28, %v433_v27  ;;  %v418_v31 = vld [vmem:[%s1394_s2 + $0x18] sm:$0xff]  ;;  %v436_v35 = vld [vmem:[%s1394_s2 + $0xa8] sm:$0xff]  ;;  %v419_v36 = vld [vmem:[%s1394_s2 + $0x20] sm:$0xff] }
   0x8   :  { %922 = vset.pattern.permute.xlu0 %v970_v14  ;;  %v881_v32 = vpack.c.bf16 %v418_v31, %v417_v29  ;;  %v883_v37 = vpack.c.bf16 %v436_v35, %v435_v34  ;;  %v420_v38 = vld [vmem:[%s1394_s2 + $0x28] sm:$0xff]  ;;  %v437_v40 = vld [vmem:[%s1394_s2 + $0xb0] sm:$0xff]  ;;  %v438_v41 = vld [vmem:[%s1394_s2 + $0xb8] sm:$0xff] }
   0x9   :  { %850 = vmatpush3.bf16.msra.mxu0 %v849_v10  ;;  %251 = vperm.xlu0 %922, %v1020_v2   ;;  %v885_v39 = vpack.c.bf16 %v420_v38, %v419_v36  ;;  %v421_v42 = vld [vmem:[%s1394_s2 + $0x30] sm:$0xff]  ;;  %v887_v43 = vpack.c.bf16 %v438_v41, %v437_v40  ;;  %v422_v44 = vld [vmem:[%s1394_s2 + $0x38] sm:$0xff]  ;;  %v439_v46 = vld [vmem:[%s1394_s2 + $0xc0] sm:$0xff] }
   0xa   :  { %876 = vmatprep.subr.bf16.mxu0 %v875_v23  ;;  %v889_v45 = vpack.c.bf16 %v422_v44, %v421_v42  ;;  %v440_v47 = vld [vmem:[%s1394_s2 + $0xc8] sm:$0xff]  ;;  %v423_v48 = vld [vmem:[%s1394_s2 + $0x40] sm:$0xff]  ;;  %v441_v52 = vld [vmem:[%s1394_s2 + $0xd0] sm:$0xff] }
   0xb   :  { %921 = vset.pattern.permute.xlu1 %v968_v9  ;;  %v891_v49 = vpack.c.bf16 %v440_v47, %v439_v46  ;;  %v424_v50 = vld [vmem:[%s1394_s2 + $0x48] sm:$0xff]  ;;  %v442_v53 = vld [vmem:[%s1394_s2 + $0xd8] sm:$0xff]  ;;  %v425_v54 = vld [vmem:[%s1394_s2 + $0x50] sm:$0xff] }
   0xc   :  { %796 = vmatmul.mubr.msk.f32.vlgmr.msra.gmra.mrb[0].mxu0 %vm40_vm1, %v26_v13  ;;  %188 = vperm.xlu1 %921, %v1041_v11   ;;  %v893_v51 = vpack.c.bf16 %v424_v50, %v423_v48  ;;  %v895_v55 = vpack.c.bf16 %v442_v53, %v441_v52  ;;  %v426_v56 = vld [vmem:[%s1394_s2 + $0x58] sm:$0xff]  ;;  %v443_v58 = vld [vmem:[%s1394_s2 + $0xe0] sm:$0xff]  ;;  %v444_v59 = vld [vmem:[%s1394_s2 + $0xe8] sm:$0xff] }
   0xd   :  { %798 = vmatprep.mubr.msk.f32.mxu0 %vm966_vm0, %v967_v8  ;;  %923 = vset.pattern.permute.xlu0 %v969_v12  ;;  %v897_v57 = vpack.c.bf16 %v426_v56, %v425_v54  ;;  %v427_v60 = vld [vmem:[%s1394_s2 + $0x60] sm:$0xff]  ;;  %v899_v61 = vpack.c.bf16 %v444_v59, %v443_v58  ;;  %v428_v62 = vld [vmem:[%s1394_s2 + $0x68] sm:$0xff]  ;;  %v429_v3 = vld [vmem:[%s1394_s2 + $0x70] sm:$0xff] }
   0xe   :  { %158 = vperm.xlu0 %923, %v1020_v2   ;;  %878 = vmatpush3.bf16.msra.mxu0 %v877_v25  ;;  %v901_v63 = vpack.c.bf16 %v428_v62, %v427_v60  ;;  %v430_v5 = vld [vmem:[%s1394_s2 + $0x78] sm:$0xff]  ;;  %v447_v7 = vld [vmem:[%s1395_s5] sm:$0xff]  ;;  %v456_v21 = vld [vmem:[%s1395_s5 + $0x48] sm:$0xff] }
   0xf   :  { %880 = vmatprep.subr.bf16.mxu0 %v879_v30  ;;  %v905_v6 = vpack.c.bf16 %v430_v5, %v429_v3  ;;  %v450_v12 = vld [vmem:[%s1395_s5 + $0x18] sm:$0xff]  ;;  %v455_v20 = vld [vmem:[%s1395_s5 + $0x40] sm:$0xff]  ;;  %v457_v23 = vld [vmem:[%s1395_s5 + $0x50] sm:$0xff] }
  0x10   :  { %799 = vmatmul.mubr.msk.f32.gmra.mrb[2].mxu0 %vm40_vm1, %v27_v15  ;;  %924 = vset.pattern.permute.xlu1 %v964_v0  ;;  %v452_v15 = vld [vmem:[%s1395_s5 + $0x28] sm:$0xff]  ;;  %v864_v22 = vpack.c.bf16 %v456_v21, %v455_v20  ;;  %v458_v24 = vld [vmem:[%s1395_s5 + $0x58] sm:$0xff]  ;;  %v461_v29 = vld [vmem:[%s1395_s5 + $0x70] sm:$0xff] }
  0x11   :  { %801 = vmatprep.mubr.msk.f32.mxu0 %vm966_vm0, %v967_v8  ;;  %221 = vperm.xlu1 %924, %v1041_v11   ;;  %v867_v25 = vpack.c.bf16 %v458_v24, %v457_v23  ;;  %v460_v27 = vld [vmem:[%s1395_s5 + $0x68] sm:$0xff]  ;;  %v462_v30 = vld [vmem:[%s1395_s5 + $0x78] sm:$0xff] }
  0x12   :  { %164 = vperm.xlu0 %923, %v1072_v17   ;;  %882 = vmatpush3.bf16.msra.mxu0 %v881_v32  ;;  %v873_v31 = vpack.c.bf16 %v462_v30, %v461_v29  ;;  %v154_v32 = vlaneseq }
  0x13   :  { %884 = vmatprep.subr.bf16.mxu0 %v883_v37 }
  0x14   :  { %802 = vmatmul.mubr.msk.f32.gmra.mrb[4].mxu0 %vm40_vm1, %v28_v16  ;;  %v1255_v35 = vand.u32 127, %v154_v32 }
  0x15   :  { %925 = vset.pattern.permute.xlu1 %v971_v18 }
  0x16   :  { %284 = vperm.xlu1 %925, %v1020_v2   ;;  %930 = vset.pattern.permute.xlu0 %v972_v19 }
  0x17   :  { %350 = vperm.xlu0 %930, %v1020_v2   ;;  %886 = vmatpush3.bf16.msra.mxu0 %v885_v39 }
  0x18   :  { %888 = vmatprep.subr.bf16.mxu0 %v887_v43 }
  0x1a   :  { %926 = vset.pattern.permute.xlu1 %v968_v9  ;;  %v448_v9 = vld [vmem:[%s1395_s5 + $0x8] sm:$0xff] }
  0x1b   :  { %191 = vperm.xlu1 %926, %v1072_v17   ;;  %933 = vset.pattern.permute.xlu0 %v973_v26  ;;  %v852_v10 = vpack.c.bf16 %v448_v9, %v447_v7 }
  0x1c   :  { %383 = vperm.xlu0 %933, %v1020_v2   ;;  %890 = vmatpush3.bf16.msra.mxu0 %v889_v45 }
  0x1d   :  { %892 = vmatprep.subr.bf16.mxu0 %v891_v49  ;;  %853 = vmatpush3.bf16.msra.mxu1 %v852_v10 }
  0x1e   :  { %854 = vmatprep.subr.bf16.mxu1 %v965_v1 }
  0x1f   :  { %927 = vset.pattern.permute.xlu1 %v970_v14 }
  0x20   :  { %254 = vperm.xlu1 %927, %v1041_v11   ;;  %934 = vset.pattern.permute.xlu0 %v974_v33 }
  0x21   :  { %317 = vperm.xlu0 %934, %v1020_v2   ;;  %894 = vmatpush3.bf16.msra.mxu0 %v893_v51  ;;  %v446_v2 = vld [vmem:[%s1394_s2 + $0xf8] sm:$0xff] }
  0x22   :  { %896 = vmatprep.subr.bf16.mxu0 %v895_v55 }
  0x24   :  { %928 = vset.pattern.permute.xlu1 %v964_v0  ;;  %v445_v0 = vld [vmem:[%s1394_s2 + $0xf0] sm:$0xff] }
  0x25   :  { %224 = vperm.xlu1 %928, %v1072_v17   ;;  %323 = vperm.xlu0 %934, %v1072_v17   ;;  %v903_v4 = vpack.c.bf16 %v446_v2, %v445_v0 }
  0x26   :  { %898 = vmatpush3.bf16.msra.mxu0 %v897_v57 }
  0x27   :  { %900 = vmatprep.subr.bf16.mxu0 %v899_v61 }
  0x29   :  { %929 = vset.pattern.permute.xlu1 %v971_v18  ;;  %939 = vset.pattern.permute.xlu0 %v973_v26 }
  0x2a   :  { %287 = vperm.xlu1 %929, %v1041_v11   ;;  %389 = vperm.xlu0 %939, %v1072_v17  }
  0x2b   :  { %902 = vmatpush3.bf16.msra.mxu0 %v901_v63 }
  0x2c   :  { %904 = vmatprep.subr.bf16.mxu0 %v903_v4 }
  0x2e   :  { %931 = vset.pattern.permute.xlu1 %v970_v14  ;;  %v451_v14 = vld [vmem:[%s1395_s5 + $0x20] sm:$0xff] }
  0x2f   :  { %257 = vperm.xlu1 %931, %v1072_v17   ;;  %906 = vmatpush3.bf16.msra.mxu0 %v905_v6  ;;  %v858_v16 = vpack.c.bf16 %v452_v15, %v451_v14 }
  0x33   :  { %932 = vset.pattern.permute.xlu1 %v974_v33 }
  0x34   :  { %320 = vperm.xlu1 %932, %v1041_v11  }
  0x38   :  { %935 = vset.pattern.permute.xlu1 %v971_v18  ;;  %v454_v18 = vld [vmem:[%s1395_s5 + $0x38] sm:$0xff] }
  0x39   :  { %290 = vperm.xlu1 %935, %v1072_v17  }
  0x3d   :  { %936 = vset.pattern.permute.xlu1 %v972_v19 }
  0x3e   :  { %353 = vperm.xlu1 %936, %v1041_v11  }
  0x42   :  { %937 = vset.pattern.permute.xlu1 %v973_v26  ;;  %v459_v26 = vld [vmem:[%s1395_s5 + $0x60] sm:$0xff] }
  0x43   :  { %386 = vperm.xlu1 %937, %v1041_v11   ;;  %v449_v11 = vld [vmem:[%s1395_s5 + $0x10] sm:$0xff]  ;;  %v870_v28 = vpack.c.bf16 %v460_v27, %v459_v26 }
  0x44   :  { %v855_v13 = vpack.c.bf16 %v450_v12, %v449_v11 }
  0x46   :  { %856 = vmatpush3.bf16.msra.mxu1 %v855_v13 }
  0x47   :  { %938 = vset.pattern.permute.xlu1 %v972_v19  ;;  %857 = vmatprep.subr.bf16.mxu1 %v965_v1 }
  0x48   :  { %356 = vperm.xlu1 %938, %v1072_v17   ;;  %v453_v17 = vld [vmem:[%s1395_s5 + $0x30] sm:$0xff] }
  0x49   :  { %v861_v19 = vpack.c.bf16 %v454_v18, %v453_v17 }
  0x4a   :  { %859 = vmatpush3.bf16.msra.mxu1 %v858_v16 }
  0x4b   :  { %860 = vmatprep.subr.bf16.mxu1 %v965_v1 }
  0x4e   :  { %862 = vmatpush3.bf16.msra.mxu1 %v861_v19 }
  0x4f   :  { %863 = vmatprep.subr.bf16.mxu1 %v965_v1 }
  0x52   :  { %865 = vmatpush3.bf16.msra.mxu1 %v864_v22 }
  0x53   :  { %866 = vmatprep.subr.bf16.mxu1 %v965_v1 }
  0x56   :  { %868 = vmatpush3.bf16.msra.mxu1 %v867_v25 }
  0x57   :  { %869 = vmatprep.subr.bf16.mxu1 %v965_v1 }
  0x5a   :  { %871 = vmatpush3.bf16.msra.mxu1 %v870_v28 }
  0x5b   :  { %872 = vmatprep.subr.bf16.mxu1 %v965_v1  ;;  %v1260_v1 = vadd.s32 128, %v1255_v35 }
  0x5e   :  { %874 = vmatpush3.bf16.msra.mxu1 %v873_v31 }
  0x81   :  { %v219_v33 = vpop.permute.xlu1 %218 }
  0x82   :  { %vm226_vm6 = vcmp.eq.s32.totalorder %v1255_v35, %v219_v33  ;;  %vm227_vm7 = vcmp.eq.s32.totalorder %v1260_v1, %v219_v33 }
  0x83   :  { %v186_v34 = vpop.permute.xlu0 %185  ;;  %v680_v48 = vsel %vm226_vm6, 1.0, %v967_v8  ;;  %v681_v49 = vsel %vm227_vm7, 1.0, %v967_v8 }
  0x84   :  { %vm193_vm2 = vcmp.eq.s32.totalorder %v1255_v35, %v186_v34  ;;  %vm194_vm3 = vcmp.eq.s32.totalorder %v1260_v1, %v186_v34 }
  0x85   :  { %v674_v41 = vsel %vm193_vm2, 1.0, %v967_v8  ;;  %v675_v42 = vsel %vm194_vm3, 1.0, %v967_v8 }
  0x86   :  { %v1257_v36 = vpop.permute.xlu1 %161 }
  0x87   :  { %vm168_vm3 = vcmp.eq.s32.totalorder %v1255_v35, %v1257_v36 }
  0x88   :  { %v252_v37 = vpop.permute.xlu0 %251  ;;  %v670_v18 = vsel %vm168_vm3, 1.0, %v967_v8 }
  0x89   :  { %vm259_vm8 = vcmp.eq.s32.totalorder %v1255_v35, %v252_v37  ;;  %vm260_vm9 = vcmp.eq.s32.totalorder %v1260_v1, %v252_v37 }
  0x8a   :  { %v686_v54 = vsel %vm259_vm8, 1.0, %v967_v8  ;;  %v687_v55 = vsel %vm260_vm9, 1.0, %v967_v8 }
  0x8b   :  { %v1262_v38 = vpop.permute.xlu1 %188 }
  0x8c   :  { %vm196_vm6 = vcmp.eq.s32.totalorder %v1260_v1, %v1262_v38 }
  0x8d   :  { %v159_v39 = vpop.permute.xlu0 %158  ;;  %v677_v21 = vsel %vm196_vm6, 1.0, %v967_v8 }
  0x8e   :  { %vm166_vm4 = vcmp.eq.s32.totalorder %v1255_v35, %v159_v39  ;;  %vm167_vm5 = vcmp.eq.s32.totalorder %v1260_v1, %v159_v39 }
  0x8f   :  { %v668_v43 = vsel %vm166_vm4, 1.0, %v967_v8  ;;  %v669_v44 = vsel %vm167_vm5, 1.0, %v967_v8  ;;  %vm169_vm4 = vcmp.eq.s32.totalorder %v1260_v1, %v1257_v36  ;;  %vm195_vm5 = vcmp.eq.s32.totalorder %v1255_v35, %v1262_v38 }
  0x90   :  { %v1268_v40 = vpop.permute.xlu1 %221  ;;  %v211_v46 = vadd.f32 %v674_v41, %v668_v43  ;;  %v212_v47 = vadd.f32 %v675_v42, %v669_v44  ;;  %v671_v19 = vsel %vm169_vm4, 1.0, %v967_v8  ;;  %v676_v20 = vsel %vm195_vm5, 1.0, %v967_v8 }
  0x91   :  { %v1276_v45 = vpop.permute.xlu0 %164  ;;  %vm228_vm7 = vcmp.eq.s32.totalorder %v1255_v35, %v1268_v40  ;;  %vm229_vm8 = vcmp.eq.s32.totalorder %v1260_v1, %v1268_v40  ;;  %v213_v22 = vadd.f32 %v676_v20, %v670_v18  ;;  %v214_v23 = vadd.f32 %v677_v21, %v671_v19 }
  0x92   :  { %v244_v52 = vadd.f32 %v680_v48, %v211_v46  ;;  %v245_v53 = vadd.f32 %v681_v49, %v212_v47  ;;  %v682_v24 = vsel %vm228_vm7, 1.0, %v967_v8  ;;  %v683_v25 = vsel %vm229_vm8, 1.0, %v967_v8 }
  0x93   :  { %v246_v27 = vadd.f32 %v682_v24, %v213_v22  ;;  %v247_v28 = vadd.f32 %v683_v25, %v214_v23 }
  0x94   :  { %v277_v58 = vadd.f32 %v686_v54, %v244_v52  ;;  %v278_v59 = vadd.f32 %v687_v55, %v245_v53 }
  0x95   :  { %v285_v50 = vpop.permute.xlu1 %284 }
  0x96   :  { %v351_v51 = vpop.permute.xlu0 %350  ;;  %vm292_vm10 = vcmp.eq.s32.totalorder %v1255_v35, %v285_v50  ;;  %vm293_vm11 = vcmp.eq.s32.totalorder %v1260_v1, %v285_v50 }
  0x97   :  { %v692_v60 = vsel %vm292_vm10, 1.0, %v967_v8  ;;  %v693_v61 = vsel %vm293_vm11, 1.0, %v967_v8  ;;  %vm358_vm12 = vcmp.eq.s32.totalorder %v1255_v35, %v351_v51  ;;  %vm359_vm13 = vcmp.eq.s32.totalorder %v1260_v1, %v351_v51 }
  0x98   :  { %v310_v63 = vadd.f32 %v692_v60, %v277_v58  ;;  %v311_v0 = vadd.f32 %v693_v61, %v278_v59  ;;  %v704_v3 = vsel %vm358_vm12, 1.0, %v967_v8  ;;  %v705_v4 = vsel %vm359_vm13, 1.0, %v967_v8 }
  0x99   :  { %vm170_vm11 = vcmp.eq.s32.totalorder %v1255_v35, %v1276_v45  ;;  %vm171_vm12 = vcmp.eq.s32.totalorder %v1260_v1, %v1276_v45 }
  0x9a   :  { %v192_v56 = vpop.permute.xlu1 %191  ;;  %v672_v31 = vsel %vm170_vm11, 1.0, %v967_v8  ;;  %v673_v32 = vsel %vm171_vm12, 1.0, %v967_v8 }
  0x9b   :  { %v384_v57 = vpop.permute.xlu0 %383  ;;  %vm197_vm13 = vcmp.eq.s32.totalorder %v1255_v35, %v192_v56 }
  0x9c   :  { %vm391_vm14 = vcmp.eq.s32.totalorder %v1255_v35, %v384_v57  ;;  %vm392_vm15 = vcmp.eq.s32.totalorder %v1260_v1, %v384_v57  ;;  %v678_v33 = vsel %vm197_vm13, 1.0, %v967_v8 }
  0x9d   :  { %v710_v11 = vsel %vm391_vm14, 1.0, %v967_v8  ;;  %v711_v12 = vsel %vm392_vm15, 1.0, %v967_v8  ;;  %vm198_vm14 = vcmp.eq.s32.totalorder %v1260_v1, %v192_v56  ;;  %v215_v39 = vadd.f32 %v678_v33, %v672_v31 }
  0x9e   :  { %v679_v34 = vsel %vm198_vm14, 1.0, %v967_v8 }
  0x9f   :  { %v255_v62 = vpop.permute.xlu1 %254  ;;  %v216_v40 = vadd.f32 %v679_v34, %v673_v32 }
  0xa0   :  { %v318_v2 = vpop.permute.xlu0 %317  ;;  %vm261_vm9 = vcmp.eq.s32.totalorder %v1255_v35, %v255_v62  ;;  %vm262_vm10 = vcmp.eq.s32.totalorder %v1260_v1, %v255_v62 }
  0xa1   :  { %vm325_vm1 = vcmp.eq.s32.totalorder %v1255_v35, %v318_v2  ;;  %vm326_vm2 = vcmp.eq.s32.totalorder %v1260_v1, %v318_v2  ;;  %v688_v29 = vsel %vm261_vm9, 1.0, %v967_v8  ;;  %v689_v30 = vsel %vm262_vm10, 1.0, %v967_v8 }
  0xa2   :  { %v698_v5 = vsel %vm325_vm1, 1.0, %v967_v8  ;;  %v699_v6 = vsel %vm326_vm2, 1.0, %v967_v8  ;;  %v279_v37 = vadd.f32 %v688_v29, %v246_v27  ;;  %v280_v38 = vadd.f32 %v689_v30, %v247_v28 }
  0xa3   :  { %v343_v7 = vadd.f32 %v698_v5, %v310_v63  ;;  %v344_v9 = vadd.f32 %v699_v6, %v311_v0 }
  0xa4   :  { %v225_v10 = vpop.permute.xlu1 %224  ;;  %v324_v57 = vpop.permute.xlu0 %323 }
  0xa5   :  { %v376_v13 = vadd.f32 %v704_v3, %v343_v7  ;;  %v377_v14 = vadd.f32 %v705_v4, %v344_v9  ;;  %vm230_vm2 = vcmp.eq.s32.totalorder %v1255_v35, %v225_v10  ;;  %vm231_vm3 = vcmp.eq.s32.totalorder %v1260_v1, %v225_v10 }
  0xa6   :  { %v684_v43 = vsel %vm230_vm2, 1.0, %v967_v8  ;;  %v685_v44 = vsel %vm231_vm3, 1.0, %v967_v8  ;;  %vm329_vm12 = vcmp.eq.s32.totalorder %v1255_v35, %v324_v57  ;;  %vm330_vm13 = vcmp.eq.s32.totalorder %v1260_v1, %v324_v57 }
  0xa7   :  { %v409_v15 = vadd.f32 %v710_v11, %v376_v13  ;;  %v410_v16 = vadd.f32 %v711_v12, %v377_v14  ;;  %v248_v48 = vadd.f32 %v684_v43, %v215_v39  ;;  %v249_v49 = vadd.f32 %v685_v44, %v216_v40 }
  0xa8   :  { %v702_v6 = vsel %vm329_vm12, 1.0, %v967_v8  ;;  %v703_v7 = vsel %vm330_vm13, 1.0, %v967_v8 }
  0xa9   :  { %v288_v17 = vpop.permute.xlu1 %287  ;;  %607 = vmatprep.mubr.f32.mxu0 %v410_v16  ;;  %v390_v9 = vpop.permute.xlu0 %389 }
  0xaa   :  { %608 = vmatmul.mubr.f32.vlgmr.msra.gmra.mrb[6].mxu0 %v409_v15  ;;  %vm294_vm15 = vcmp.eq.s32.totalorder %v1255_v35, %v288_v17  ;;  %vm295_vm1 = vcmp.eq.s32.totalorder %v1260_v1, %v288_v17  ;;  %vm396_vm2 = vcmp.eq.s32.totalorder %v1260_v1, %v390_v9 }
  0xab   :  { %v694_v41 = vsel %vm294_vm15, 1.0, %v967_v8  ;;  %v695_v42 = vsel %vm295_vm1, 1.0, %v967_v8  ;;  %vm395_vm1 = vcmp.eq.s32.totalorder %v1255_v35, %v390_v9  ;;  %v715_v20 = vsel %vm396_vm2, 1.0, %v967_v8 }
  0xac   :  { %v312_v46 = vadd.f32 %v694_v41, %v279_v37  ;;  %v313_v47 = vadd.f32 %v695_v42, %v280_v38  ;;  %v714_v19 = vsel %vm395_vm1, 1.0, %v967_v8 }
  0xae   :  { %v258_v26 = vpop.permute.xlu1 %257 }
  0xaf   :  { %vm263_vm6 = vcmp.eq.s32.totalorder %v1255_v35, %v258_v26  ;;  %vm264_vm7 = vcmp.eq.s32.totalorder %v1260_v1, %v258_v26 }
  0xb0   :  { %v690_v52 = vsel %vm263_vm6, 1.0, %v967_v8  ;;  %v691_v53 = vsel %vm264_vm7, 1.0, %v967_v8 }
  0xb1   :  { %v281_v58 = vadd.f32 %v690_v52, %v248_v48  ;;  %v282_v59 = vadd.f32 %v691_v53, %v249_v49 }
  0xb3   :  { %v321_v36 = vpop.permute.xlu1 %320 }
  0xb4   :  { %vm327_vm4 = vcmp.eq.s32.totalorder %v1255_v35, %v321_v36  ;;  %vm328_vm5 = vcmp.eq.s32.totalorder %v1260_v1, %v321_v36 }
  0xb5   :  { %v700_v50 = vsel %vm327_vm4, 1.0, %v967_v8  ;;  %v701_v51 = vsel %vm328_vm5, 1.0, %v967_v8 }
  0xb6   :  { %v345_v54 = vadd.f32 %v700_v50, %v312_v46  ;;  %v346_v55 = vadd.f32 %v701_v51, %v313_v47 }
  0xb8   :  { %v291_v45 = vpop.permute.xlu1 %290 }
  0xb9   :  { %vm296_vm8 = vcmp.eq.s32.totalorder %v1255_v35, %v291_v45  ;;  %vm297_vm9 = vcmp.eq.s32.totalorder %v1260_v1, %v291_v45 }
  0xba   :  { %v696_v60 = vsel %vm296_vm8, 1.0, %v967_v8  ;;  %v697_v61 = vsel %vm297_vm9, 1.0, %v967_v8 }
  0xbb   :  { %v314_v3 = vadd.f32 %v696_v60, %v281_v58  ;;  %v315_v4 = vadd.f32 %v697_v61, %v282_v59  ;;  %v716_v59 = vld [vmem:[%s1397_s6] ss:$0 sm:$0xff] }
  0xbd   :  { %v354_v56 = vpop.permute.xlu1 %353  ;;  %v347_v14 = vadd.f32 %v702_v6, %v314_v3  ;;  %v348_v15 = vadd.f32 %v703_v7, %v315_v4 }
  0xbe   :  { %vm360_vm10 = vcmp.eq.s32.totalorder %v1255_v35, %v354_v56  ;;  %vm361_vm11 = vcmp.eq.s32.totalorder %v1260_v1, %v354_v56 }
  0xbf   :  { %v706_v62 = vsel %vm360_vm10, 1.0, %v967_v8  ;;  %v707_v63 = vsel %vm361_vm11, 1.0, %v967_v8 }
  0xc0   :  { %v378_v0 = vadd.f32 %v706_v62, %v345_v54  ;;  %v379_v2 = vadd.f32 %v707_v63, %v346_v55 }
  0xc2   :  { %v387_v5 = vpop.permute.xlu1 %386 }
  0xc3   :  { %vm393_vm14 = vcmp.eq.s32.totalorder %v1255_v35, %v387_v5  ;;  %vm394_vm15 = vcmp.eq.s32.totalorder %v1260_v1, %v387_v5 }
  0xc4   :  { %v712_v10 = vsel %vm393_vm14, 1.0, %v967_v8  ;;  %v713_v11 = vsel %vm394_vm15, 1.0, %v967_v8 }
  0xc5   :  { %v411_v12 = vadd.f32 %v712_v10, %v378_v0  ;;  %v412_v13 = vadd.f32 %v713_v11, %v379_v2 }
  0xc7   :  { %612 = vmatprep.mubr.f32.mxu0 %v412_v13  ;;  %v357_v16 = vpop.permute.xlu1 %356 }
  0xc8   :  { %613 = vmatmul.mubr.f32.gmra.mrb[8].mxu0 %v411_v12  ;;  %vm362_vm3 = vcmp.eq.s32.totalorder %v1255_v35, %v357_v16  ;;  %vm363_vm4 = vcmp.eq.s32.totalorder %v1260_v1, %v357_v16  ;;  %v661_v35 = vld [vmem:[%s1396_s4] ss:$0 sm:$0xff] }
  0xc9   :  { %v708_v17 = vsel %vm362_vm3, 1.0, %v967_v8  ;;  %v709_v18 = vsel %vm363_vm4, 1.0, %v967_v8 }
  0xca   :  { %v380_v21 = vadd.f32 %v708_v17, %v347_v14  ;;  %v381_v22 = vadd.f32 %v709_v18, %v348_v15 }
  0xcc   :  { %v413_v23 = vadd.f32 %v714_v19, %v380_v21  ;;  %v414_v24 = vadd.f32 %v715_v20, %v381_v22 }
  0xce   :  { %617 = vmatprep.mubr.f32.mxu0 %v414_v24 }
  0xcf   :  { %618 = vmatmul.mubr.f32.gmra.mrb[10].mxu0 %v413_v23 }
  0xdf   :  { %v116_v25 = vpop.f32.mrb[0].mxu0 }
  0xe0   :  { %v117_v1 = vadd.f32 %v661_v35, %v116_v25  ;;  %v797_v26 = vpop.f32.mrb[1].mxu0 }
  0xe2   :  { %v665_v27 = vmul.f32 -1.442695, %v117_v1 }
  0xe3   :  { %v121_v28 = vpop.f32.mrb[2].mxu0 }
  0xe4   :  { %940 = vpow2.f32 %v665_v27  ;;  %v122_v29 = vadd.f32 %v661_v35, %v121_v28  ;;  %v800_v30 = vpop.f32.mrb[3].mxu0 }
  0xe6   :  { %v666_v31 = vmul.f32 -1.442695, %v122_v29 }
  0xe7   :  { %v126_v32 = vpop.f32.mrb[4].mxu0 }
  0xe8   :  { %942 = vpow2.f32 %v666_v31  ;;  %v127_v33 = vadd.f32 %v661_v35, %v126_v32  ;;  %v803_v34 = vpop.f32.mrb[5].mxu0 }
  0xea   :  { %v667_v36 = vmul.f32 -1.442695, %v127_v33 }
  0xec   :  { %944 = vpow2.f32 %v667_v36 }
  0xee   :  { %v941_v37 = vpop.eup %940 }
  0xef   :  { %v139_v38 = vadd.f32 1.0, %v941_v37 }
  0xf1   :  { %946 = vrcp.f32 %v139_v38 }
  0xf2   :  { %v943_v39 = vpop.eup %942 }
  0xf3   :  { %v140_v40 = vadd.f32 1.0, %v943_v39 }
  0xf5   :  { %948 = vrcp.f32 %v140_v40 }
  0xf6   :  { %v945_v41 = vpop.eup %944 }
  0xf7   :  { %v141_v42 = vadd.f32 1.0, %v945_v41 }
  0xf9   :  { %950 = vrcp.f32 %v141_v42 }
  0xfb   :  { %v947_v43 = vpop.eup %946 }
  0xfc   :  { %v148_v44 = vmul.f32 %v947_v43, %v117_v1 }
  0xfe   :  { %837 = vmatmul.mubr.f32.vlgmr.msra.gmra.mrb[0].mxu1 %v148_v44 }
  0xff   :  { %v949_v45 = vpop.eup %948  ;;  %839 = vmatprep.mubr.msk.f32.mxu1 %vm966_vm0, %v967_v8 }
 0x100   :  { %v149_v46 = vmul.f32 %v949_v45, %v122_v29 }
 0x102   :  { %840 = vmatmul.mubr.f32.gmra.mrb[2].mxu1 %v149_v46 }
 0x103   :  { %v951_v47 = vpop.eup %950  ;;  %842 = vmatprep.mubr.msk.f32.mxu1 %vm966_vm0, %v967_v8 }
 0x104   :  { %v150_v48 = vmul.f32 %v951_v47, %v127_v33 }
 0x106   :  { %843 = vmatmul.mubr.f32.gmra.mrb[4].mxu1 %v150_v48 }
 0x17d   :  { %v778_v49 = vpop.f32.mrb[6].mxu0 }
 0x17e   :  { %v779_v50 = vpop.f32.mrb[7].mxu0 }
 0x17f   :  { %v780_v51 = vadd.f32 %v779_v50, %v778_v49 }
 0x19b   :  { %v781_v52 = vpop.f32.mrb[8].mxu0 }
 0x19c   :  { %v782_v53 = vpop.f32.mrb[9].mxu0 }
 0x19d   :  { %v783_v54 = vadd.f32 %v782_v53, %v781_v52 }
 0x1a2   :  { %v784_v55 = vpop.f32.mrb[10].mxu0 }
 0x1a3   :  { %v785_v56 = vpop.f32.mrb[11].mxu0 }
 0x1a4   :  { %v786_v57 = vadd.f32 %v785_v56, %v784_v55 }
 0x1d1   :  { %v529_v58 = vpop.f32.mrb[0].mxu1 }
 0x1d2   :  { %v610_v60 = vadd.f32 %v780_v51, %v529_v58  ;;  %v838_v61 = vpop.f32.mrb[1].mxu1 }
 0x1d4   :  { %v630_v62 = vadd.f32 %v716_v59, %v610_v60 }
 0x1d5   :  { %v534_v8 = vpop.f32.mrb[2].mxu1 }
 0x1d6   :  { %v717_v63 = vmul.f32 -1.442695, %v630_v62  ;;  %v615_v0 = vadd.f32 %v783_v54, %v534_v8  ;;  %v841_v2 = vpop.f32.mrb[3].mxu1 }
 0x1d8   :  { %952 = vpow2.f32 %v717_v63  ;;  %v631_v3 = vadd.f32 %v716_v59, %v615_v0 }
 0x1d9   :  { %v539_v4 = vpop.f32.mrb[4].mxu1 }
 0x1da   :  { %v718_v5 = vmul.f32 -1.442695, %v631_v3  ;;  %v620_v6 = vadd.f32 %v786_v57, %v539_v4  ;;  %v844_v7 = vpop.f32.mrb[5].mxu1 }
 0x1dc   :  { %954 = vpow2.f32 %v718_v5  ;;  %v632_v9 = vadd.f32 %v716_v59, %v620_v6 }
 0x1de   :  { %v719_v10 = vmul.f32 -1.442695, %v632_v9 }
 0x1e0   :  { %956 = vpow2.f32 %v719_v10 }
 0x1e2   :  { %v953_v11 = vpop.eup %952 }
 0x1e3   :  { %v642_v12 = vadd.f32 1.0, %v953_v11 }
 0x1e5   :  { %958 = vrcp.f32 %v642_v12 }
 0x1e6   :  { %v955_v13 = vpop.eup %954 }
 0x1e7   :  { %v643_v14 = vadd.f32 1.0, %v955_v13 }
 0x1e9   :  { %960 = vrcp.f32 %v643_v14 }
 0x1ea   :  { %v957_v15 = vpop.eup %956 }
 0x1eb   :  { %v644_v16 = vadd.f32 1.0, %v957_v15 }
 0x1ed   :  { %962 = vrcp.f32 %v644_v16 }
 0x1ef   :  { %v959_v17 = vpop.eup %958 }
 0x1f0   :  { %v651_v18 = vmul.f32 %v959_v17, %v630_v62 }
 0x1f2   :  { %654 = vst [vmem:[%s1398_s7] sm:$0xff] %v651_v18 }
 0x1f3   :  { %v961_v19 = vpop.eup %960 }
 0x1f4   :  { %v652_v20 = vmul.f32 %v961_v19, %v631_v3 }
 0x1f6   :  { %655 = vst [vmem:[%s1398_s7 + $0x8] sm:$0xff] %v652_v20 }
 0x1f7   :  { %v963_v21 = vpop.eup %962 }
 0x1f8   :  { %v653_v22 = vmul.f32 %v963_v21, %v632_v9 }
 0x1fa   :  { %656 = vst [vmem:[%s1398_s7 + $0x10] sm:$0xff] %v653_v22 }

</bundles_post_ra>
